<compile_context>
chip_gen: v6e
topology: v6e:2x2x1
jax: 0.10.0
libtpu: 0.0.40
codegen_flags: <defaults>
</compile_context>

<pallas_src>
import functools
import math

import jax
import jax.numpy as jnp
from jax.experimental import pallas as pl
from jax.experimental.pallas import tpu as pltpu

_MIB = 1024 * 1024


def _round_up(v, m):
    return (v + m - 1) // m * m


def _sublane_align(dtype):
    # Rows per packed vreg sublane group: f32 -> 8, bf16 -> 16, int8/fp8 -> 32.
    return max(8, 32 // jnp.dtype(dtype).itemsize)


def _choose_tile(dim, pref, align):
    """Pick (tile, padded_dim): tile is a multiple of `align`, divides padded_dim,
    and padding beyond lane/sublane alignment is avoided unless the only
    dividing tiles would be much smaller than the preferred size."""
    pref = max(int(pref), align)
    d_al = _round_up(dim, align)
    if d_al <= pref:
        return d_al, d_al
    q = d_al // align
    max_s = pref // align
    best = 1
    for s in range(max_s, 0, -1):
        if q % s == 0:
            best = s
            break
    tile = best * align
    if tile * 2 >= pref:            # good enough: no extra padding needed
        return tile, d_al
    tile = max_s * align            # fall back to padding with the preferred tile
    return tile, _round_up(d_al, tile)


def _device_defaults():
    """(tm, tn, tk, vmem_cap_bytes) tuned per TPU generation."""
    try:
        kind = jax.devices()[0].device_kind.lower()
    except Exception:
        kind = ""
    if "v5 lite" in kind or "v5e" in kind or "v5lite" in kind:
        # v5e ridge ~240 FLOP/B -> 512x512 output tile crosses it; 128 MiB VMEM.
        return 512, 512, 1024, 100 * _MIB
    if "v7" in kind or "tpu7" in kind or "7x" in kind:
        # v7x ridge ~310 FLOP/B; only 64 MiB VMEM per TensorCore.
        return 1024, 512, 1024, 56 * _MIB
    # v6e (and other 128 MiB VMEM parts): ridge ~700 FLOP/B -> large tiles.
    return 1536, 1024, 1024, 100 * _MIB


def _matmul_kernel(x_ref, w_ref, o_ref):
    """Single-step contraction: whole K for this output tile (no accumulator)."""
    o_ref[...] = jnp.dot(
        x_ref[...], w_ref[...], preferred_element_type=jnp.float32
    ).astype(o_ref.dtype)


def _matmul_acc_kernel(x_ref, w_ref, o_ref, acc_ref):
    """K-tiled contraction with an f32 VMEM accumulator (P1 + P3)."""

    @pl.when(pl.program_id(2) == 0)
    def _init():
        acc_ref[...] = jnp.zeros_like(acc_ref)

    acc_ref[...] += jnp.dot(
        x_ref[...], w_ref[...], preferred_element_type=jnp.float32
    )

    @pl.when(pl.program_id(2) == pl.num_programs(2) - 1)
    def _finalize():
        o_ref[...] = acc_ref[...].astype(o_ref.dtype)


@functools.partial(jax.jit, static_argnames=("tm", "tn", "tk", "allow_resident"))
def query_forward(x, weight, *, tm=None, tn=None, tk=None, allow_resident=True):
    """Pallas equivalent of Query.forward: x @ weight.T (nn.Linear, no bias).

    x:      (B, S, dim_input)
    weight: (dim_attn, dim_input)   -- native PyTorch nn.Linear layout
    returns (B, S, dim_attn) in x.dtype
    """
    B, S, K = x.shape
    N, K_w = weight.shape
    assert K_w == K, "weight feature dim must match x feature dim"
    M = B * S

    in_isz = jnp.dtype(x.dtype).itemsize
    out_isz = in_isz
    m_align = _sublane_align(x.dtype)

    tm_d, tn_d, tk_d, vmem_cap = _device_defaults()
    tm = tm_d if tm is None else tm
    tn = tn_d if tn is None else tn
    tk = tk_d if tk is None else tk
    budget = int(vmem_cap * 0.8)

    x2d = x.reshape(M, K)
    # Pre-transpose the weight ONCE to (K, N): the contraction dim lands on the
    # sublanes of the RHS tile, so jnp.dot feeds the MXU with no per-step
    # transpose, and the output lane dim (N) is lane-dense.
    w_t = weight.T

    # ---------------- tile / path selection ----------------
    tm_e, M_p = _choose_tile(M, tm, m_align)
    N_al = _round_up(N, 128)
    K_al = _round_up(K, 128)

    # Weight-resident path: DMA the whole (K, N) weight once (constant
    # index_map) and stream only activations. On v7x each TensorCore holds its
    # own copy; acceptable for weights within the (halved) VMEM budget.
    resident_fp = (2 * K_al * N_al * in_isz        # weight buffers
                   + 2 * tm_e * K_al * in_isz      # x tile, double-buffered
                   + 2 * tm_e * N_al * out_isz)    # out tile, double-buffered
    use_resident = allow_resident and resident_fp <= budget

    if use_resident:
        K_p, N_p = K_al, N_al
        grid = (M_p // tm_e,)
        in_specs = [
            pl.BlockSpec((tm_e, K_p), lambda i: (i, 0)),
            pl.BlockSpec((K_p, N_p), lambda i: (0, 0)),   # fetched once, reused
        ]
        out_specs = pl.BlockSpec((tm_e, N_p), lambda i: (i, 0))
        scratch_shapes = ()
        kernel = _matmul_kernel
        dim_sem = ("parallel",)
        footprint = resident_fp
        bytes_accessed = (M_p * K_p + K_p * N_p) * in_isz + M_p * N_p * out_isz
    else:
        tn_e, N_p = _choose_tile(N, tn, 128)
        tk_e, K_p = _choose_tile(K, tk, 128)

        def _tiled_fp(a_m, a_n, a_k, kt):
            fp = (2 * (a_m * a_k + a_k * a_n) * in_isz
                  + 2 * a_m * a_n * out_isz)
            if kt > 1:
                fp += a_m * a_n * 4          # f32 accumulator scratch
            return fp

        # Shrink the largest tile dimension until the double-buffered footprint
        # fits the per-generation VMEM budget.
        while True:
            kt = K_p // tk_e
            footprint = _tiled_fp(tm_e, tn_e, tk_e, kt)
            if footprint <= budget:
                break
            if tm_e >= max(tn_e, tk_e) and tm_e > m_align:
                tm_e, M_p = _choose_tile(M, max(m_align, tm_e // 2), m_align)
            elif tn_e >= tk_e and tn_e > 128:
                tn_e, N_p = _choose_tile(N, max(128, tn_e // 2), 128)
            elif tk_e > 128:
                tk_e, K_p = _choose_tile(K, max(128, tk_e // 2), 128)
            else:
                break

        kt = K_p // tk_e
        mt, nt = M_p // tm_e, N_p // tn_e
        if kt == 1:
            # Whole K in one step: skip the accumulator and pl.when branches.
            grid = (mt, nt)
            in_specs = [
                pl.BlockSpec((tm_e, K_p), lambda i, j: (i, 0)),
                pl.BlockSpec((K_p, tn_e), lambda i, j: (0, j)),
            ]
            out_specs = pl.BlockSpec((tm_e, tn_e), lambda i, j: (i, j))
            scratch_shapes = ()
            kernel = _matmul_kernel
            dim_sem = ("parallel", "parallel")
        else:
            grid = (mt, nt, kt)
            in_specs = [
                pl.BlockSpec((tm_e, tk_e), lambda i, j, k: (i, k)),
                pl.BlockSpec((tk_e, tn_e), lambda i, j, k: (k, j)),
            ]
            out_specs = pl.BlockSpec((tm_e, tn_e), lambda i, j, k: (i, j))
            scratch_shapes = (pltpu.VMEM((tm_e, tn_e), jnp.float32),)
            kernel = _matmul_acc_kernel
            dim_sem = ("parallel", "parallel", "arbitrary")

        steps = mt * nt * kt
        bytes_accessed = (steps * (tm_e * tk_e + tk_e * tn_e) * in_isz
                          + M_p * N_p * out_isz)

    # ------------- padding (usually only alignment remainders) -------------
    if (M_p, K_p) != (M, K):
        x2d = jnp.pad(x2d, ((0, M_p - M), (0, K_p - K)))
    if (K_p, N_p) != (K, N):
        w_t = jnp.pad(w_t, ((0, K_p - K), (0, N_p - N)))

    # Scoped-VMEM budget from the actual buffer set (+25% headroom), capped
    # near the per-generation physical limit; 32 MiB floor for compiler scratch.
    vmem_limit = int(min(vmem_cap, max(32 * _MIB, int(footprint * 1.25))))

    out2d = pl.pallas_call(
        kernel,
        out_shape=jax.ShapeDtypeStruct((M_p, N_p), x.dtype),
        grid_spec=pltpu.PrefetchScalarGridSpec(
            num_scalar_prefetch=0,
            grid=grid,
            in_specs=in_specs,
            out_specs=out_specs,
            scratch_shapes=scratch_shapes,
        ),
        compiler_params=pltpu.CompilerParams(
            dimension_semantics=dim_sem,
            vmem_limit_bytes=vmem_limit,
        ),
        cost_estimate=pl.CostEstimate(
            flops=2 * M_p * N_p * K_p,
            transcendentals=0,
            bytes_accessed=int(bytes_accessed),
        ),
    )(x2d, w_t)

    return out2d[:M, :N].reshape(B, S, N)


if __name__ == "__main__":
    # Small shapes consistent with the module's forward.
    batch, seq, dim_input, dim_attn = 2, 8, 32, 16

    key = jax.random.PRNGKey(0)
    kx, kw = jax.random.split(key)

    x = jax.random.normal(kx, (batch, seq, dim_input), dtype=jnp.float32)
    # Synthetic weight matching nn.Linear(dim_input, dim_attn, bias=False)
    # parameter shape: (dim_attn, dim_input).
    bound = 1.0 / math.sqrt(dim_input)
    weight = jax.random.uniform(
        kw, (dim_attn, dim_input), minval=-bound, maxval=bound, dtype=jnp.float32
    )

    # f32 path (weight-resident fast path for these small dims).
    out = query_forward(x, weight)
    jax.block_until_ready(out)
    ref = jnp.einsum("bsd,ad->bsa", x, weight)
    assert out.shape == (batch, seq, dim_attn)
    assert jnp.allclose(out, ref, atol=1e-4, rtol=1e-4)

    # bf16 operand path (halves HBM bytes, bf16 MXU, f32 accumulation).
    out_bf16 = query_forward(x.astype(jnp.bfloat16), weight.astype(jnp.bfloat16))
    jax.block_until_ready(out_bf16)
    assert jnp.allclose(out_bf16.astype(jnp.float32), ref, atol=5e-2, rtol=5e-2)

    # Exercise the tiled multi-K accumulator path (3-D grid) with overrides.
    B2, S2, K2, N2 = 2, 64, 512, 256
    x2 = jax.random.normal(kx, (B2, S2, K2), dtype=jnp.bfloat16)
    w2 = jax.random.normal(kw, (N2, K2), dtype=jnp.bfloat16) * 0.02
    ref2 = jnp.einsum("bsd,ad->bsa", x2.astype(jnp.float32), w2.astype(jnp.float32))

    out2 = query_forward(x2, w2, tm=64, tn=128, tk=128, allow_resident=False)
    jax.block_until_ready(out2)
    assert jnp.allclose(out2.astype(jnp.float32), ref2, atol=5e-2, rtol=5e-2)

    # Exercise the single-K-step tiled path (2-D grid, no accumulator).
    out3 = query_forward(x2, w2, tm=64, tn=128, tk=512, allow_resident=False)
    jax.block_until_ready(out3)
    assert jnp.allclose(out3.astype(jnp.float32), ref2, atol=5e-2, rtol=5e-2)

    print("KERNEL_OK")
</pallas_src>

<mosaic_0001>
module attributes {stable_mosaic.version = 11 : i64} {
  func.func @_matmul_kernel(%arg0: i32, %arg1: memref<16x128xf32, #tpu.memory_space<vmem>>, %arg2: memref<128x128xf32, #tpu.memory_space<vmem>>, %arg3: memref<16x128xf32, #tpu.memory_space<vmem>>) attributes {dimension_semantics = [#tpu.dimension_semantics<parallel>], iteration_bounds = array<i64: 1>, scalar_prefetch = 0 : i64, scratch_operands = 0 : i64, tpu.core_type = #tpu.core_type<tc>, window_params = [{transform_indices = @transform_0, window_bounds = array<i64: 16, 128>}, {pipeline_mode = #tpu.pipeline_mode<synchronous>, transform_indices = @transform_1, window_bounds = array<i64: 128, 128>}, {transform_indices = @transform_2, window_bounds = array<i64: 16, 128>}]} {
    %c0 = arith.constant 0 : index
    %c0_0 = arith.constant 0 : index
    %0 = vector.load %arg1[%c0, %c0_0] : memref<16x128xf32, #tpu.memory_space<vmem>>, vector<16x128xf32>
    %c0_1 = arith.constant 0 : index
    %c0_2 = arith.constant 0 : index
    %1 = vector.load %arg2[%c0_1, %c0_2] : memref<128x128xf32, #tpu.memory_space<vmem>>, vector<128x128xf32>
    %cst = arith.constant dense<0.000000e+00> : vector<16x128xf32>
    %2 = tpu.matmul %0, %1, %cst {dimension_numbers = #tpu.dot_dimension_numbers<[1], [0], [0], [1], [0, 0, 1, 1], [], []>} : vector<16x128xf32>, vector<128x128xf32>, vector<16x128xf32> -> vector<16x128xf32>
    %c0_3 = arith.constant 0 : index
    %c0_4 = arith.constant 0 : index
    %3 = vector.load %arg3[%c0_3, %c0_4] : memref<16x128xf32, #tpu.memory_space<vmem>>, vector<16x128xf32>
    tpu.vector_store %arg3[%c0_3, %c0_4], %2 {strides = array<i32>} : memref<16x128xf32, #tpu.memory_space<vmem>>, vector<16x128xf32>,
    return
  }
  func.func @transform_0(%arg0: i32) -> (i32, i32) {
    %c0_i32 = arith.constant 0 : i32
    %c0_i32_0 = arith.constant 0 : i32
    return %arg0, %c0_i32 : i32, i32
  }
  func.func @transform_1(%arg0: i32) -> (i32, i32) {
    %c0_i32 = arith.constant 0 : i32
    %c0_i32_0 = arith.constant 0 : i32
    %c0_i32_1 = arith.constant 0 : i32
    return %c0_i32, %c0_i32_0 : i32, i32
  }
  func.func @transform_2(%arg0: i32) -> (i32, i32) {
    %c0_i32 = arith.constant 0 : i32
    %c0_i32_0 = arith.constant 0 : i32
    return %arg0, %c0_i32 : i32, i32
  }
}

</mosaic_0001>

<bundles_post_ra>
// kernel: query_forward.1
= control target key start
LH: loop header
LB: loop body
LE: loop exit
PB: predicated region body
PF: predicated region fallthrough
CT: control target
= control target key end

     0   :  { %s238_s1 = inlined_call_operand.vmem [shape: f32[128,128], index: 1, kind: input, shape index: {}]   ;;  %s239_s0 = inlined_call_operand.vmem [shape: f32[16,128], index: 0, kind: input, shape index: {}]   ;;  %s240_s2 = inlined_call_operand.vmem [shape: f32[16,128], index: 2, kind: output, shape index: {}]  }
   0x1   :  { %v28_v0 = vld [vmem:[%s238_s1 + $0x78] sm:$0xff]  ;;  %v27_v1 = vld [vmem:[%s238_s1 + $0x70] sm:$0xff]  ;;  %v26_v2 = vld [vmem:[%s238_s1 + $0x68] sm:$0xff] }
   0x2   :  { %128 = vmatprep.subr.mxu0 %v28_v0  ;;  %v25_v3 = vld [vmem:[%s238_s1 + $0x60] sm:$0xff]  ;;  %v24_v5 = vld [vmem:[%s238_s1 + $0x58] sm:$0xff]  ;;  %v23_v6 = vld [vmem:[%s238_s1 + $0x50] sm:$0xff] }
   0x3   :  { %129 = vmatpush3.msra.mxu0 %v28_v0  ;;  %v11_v4 = vld [vmem:[%s239_s0] sm:$0xff]  ;;  %v22_v7 = vld [vmem:[%s238_s1 + $0x48] sm:$0xff]  ;;  %v20_v9 = vld [vmem:[%s238_s1 + $0x38] sm:$0xff] }
   0x4   :  { %130 = vmatprep.subr.mxu0 %v27_v1  ;;  %160 = vmatprep.mubr.f32.mxu0 %v11_v4  ;;  %v21_v8 = vld [vmem:[%s238_s1 + $0x40] sm:$0xff]  ;;  %v19_v10 = vld [vmem:[%s238_s1 + $0x30] sm:$0xff]  ;;  %v18_v11 = vld [vmem:[%s238_s1 + $0x28] sm:$0xff] }
   0x5   :  { %131 = vmatpush3.msra.mxu0 %v27_v1  ;;  %v17_v12 = vld [vmem:[%s238_s1 + $0x20] sm:$0xff]  ;;  %v16_v13 = vld [vmem:[%s238_s1 + $0x18] sm:$0xff]  ;;  %v15_v14 = vld [vmem:[%s238_s1 + $0x10] sm:$0xff] }
   0x6   :  { %132 = vmatprep.subr.mxu0 %v26_v2  ;;  %v14_v15 = vld [vmem:[%s238_s1 + $0x8] sm:$0xff]  ;;  %v13_v16 = vld [vmem:[%s238_s1] sm:$0xff] }
   0x7   :  { %133 = vmatpush3.msra.mxu0 %v26_v2  ;;  %v12_v17 = vld [vmem:[%s239_s0 + $0x8] sm:$0xff] }
   0x8   :  { %134 = vmatprep.subr.mxu0 %v25_v3 }
   0x9   :  { %135 = vmatpush3.msra.mxu0 %v25_v3 }
   0xa   :  { %136 = vmatprep.subr.mxu0 %v24_v5 }
   0xb   :  { %137 = vmatpush3.msra.mxu0 %v24_v5 }
   0xc   :  { %138 = vmatprep.subr.mxu0 %v23_v6 }
   0xd   :  { %139 = vmatpush3.msra.mxu0 %v23_v6 }
   0xe   :  { %140 = vmatprep.subr.mxu0 %v22_v7 }
   0xf   :  { %141 = vmatpush3.msra.mxu0 %v22_v7 }
  0x10   :  { %142 = vmatprep.subr.mxu0 %v21_v8 }
  0x11   :  { %143 = vmatpush3.msra.mxu0 %v21_v8 }
  0x12   :  { %144 = vmatprep.subr.mxu0 %v20_v9 }
  0x13   :  { %145 = vmatpush3.msra.mxu0 %v20_v9 }
  0x14   :  { %146 = vmatprep.subr.mxu0 %v19_v10 }
  0x15   :  { %147 = vmatpush3.msra.mxu0 %v19_v10 }
  0x16   :  { %148 = vmatprep.subr.mxu0 %v18_v11 }
  0x17   :  { %149 = vmatpush3.msra.mxu0 %v18_v11 }
  0x18   :  { %150 = vmatprep.subr.mxu0 %v17_v12 }
  0x19   :  { %151 = vmatpush3.msra.mxu0 %v17_v12 }
  0x1a   :  { %152 = vmatprep.subr.mxu0 %v16_v13 }
  0x1b   :  { %153 = vmatpush3.msra.mxu0 %v16_v13 }
  0x1c   :  { %154 = vmatprep.subr.mxu0 %v15_v14 }
  0x1d   :  { %155 = vmatpush3.msra.mxu0 %v15_v14 }
  0x1e   :  { %156 = vmatprep.subr.mxu0 %v14_v15 }
  0x1f   :  { %157 = vmatpush3.msra.mxu0 %v14_v15 }
  0x20   :  { %158 = vmatprep.subr.mxu0 %v13_v16 }
  0x21   :  { %159 = vmatpush3.msra.mxu0 %v13_v16 }
  0x22   :  { %161 = vmatmul.mubr.f32.vlgmr.msra.gmra.mxu0 %v12_v17 }
  0xe2   :  { %v162_v18 = vpop.f32.mrf.mxu0 }
  0xe3   :  { %105 = vst [vmem:[%s240_s2 + $0x8] sm:$0xff] %v162_v18 }
  0xe4   :  { %v95_v19 = vpop.f32.mrf.mxu0 }
  0xe5   :  { %104 = vst [vmem:[%s240_s2] sm:$0xff] %v95_v19 }

</bundles_post_ra>
